<compile_context>
chip_gen: v7x
topology: tpu7x:2x2x1
jax: 0.10.0
libtpu: 0.0.40
codegen_flags: <defaults>
</compile_context>

<pallas_src>
import jax
import jax.numpy as jnp
from jax.experimental import pallas as pl
from jax.experimental.pallas import tpu as pltpu


def _round_up(n, m):
    return pl.cdiv(n, m) * m


# ---------------------------------------------------------------------------
# Fused 3-layer MLP kernel:
#   x @ W0' + c0' -> ReLU -> @ W1' + c1' -> ReLU -> @ W2 + c2
# All intermediates stay in VMEM / vregs inside the single kernel invocation.
# ---------------------------------------------------------------------------
def _fused_mlp_kernel(x_ref, w0_ref, c0_ref, w1_ref, c1_ref, w2_ref, c2_ref,
                      o_ref):
    # Layer 0: Linear + folded BN + ReLU (bf16 operands, f32 accumulation).
    # x arrives f32 at its native width and is cast to bf16 in-kernel.
    h = jnp.dot(x_ref[...].astype(w0_ref.dtype), w0_ref[...],
                preferred_element_type=jnp.float32)
    h = jnp.maximum(h + c0_ref[...], 0.0)
    # Layer 1: Linear + folded BN + ReLU
    h = jnp.dot(h.astype(w1_ref.dtype), w1_ref[...],
                preferred_element_type=jnp.float32)
    h = jnp.maximum(h + c1_ref[...], 0.0)
    # Layer 2: output Linear (no BN / ReLU), only the 3 real output columns.
    y = jnp.dot(h.astype(w2_ref.dtype), w2_ref[...],
                preferred_element_type=jnp.float32)
    o_ref[...] = (y + c2_ref[...]).astype(o_ref.dtype)


def net_forward(params, x, *, max_batch_tile=4096):
    """Forward pass of Net (== county_mlp) as a single fused Pallas kernel."""
    B, K = x.shape
    w0, c0 = params["w0"], params["c0"]
    w1, c1 = params["w1"], params["c1"]
    w2, c2 = params["w2"], params["c2"]
    K0, C0 = w0.shape
    C1 = w1.shape[1]
    N = w2.shape[1]
    assert K == K0, f"county_dim mismatch: x has {K}, params expect {K0}"

    # Batch tile: multiple of 8 sublanes; large enough to amortize the fixed
    # per-grid-step overhead.  Ragged last block is masked by Pallas.
    Bt = min(max_batch_tile, _round_up(B, 8))
    grid = (pl.cdiv(B, Bt),)

    resident = lambda i: (0, 0)   # weights/biases resident across batch tiles
    out = pl.pallas_call(
        _fused_mlp_kernel,
        out_shape=jax.ShapeDtypeStruct((B, N), jnp.float32),
        grid=grid,
        in_specs=[
            pl.BlockSpec((Bt, K), lambda i: (i, 0)),    # x tile (native width)
            pl.BlockSpec((K0, C0), resident),           # W0' (folded BN)
            pl.BlockSpec((1, C0), resident),            # c0'
            pl.BlockSpec((C0, C1), resident),           # W1' (folded BN)
            pl.BlockSpec((1, C1), resident),            # c1'
            pl.BlockSpec((C1, N), resident),            # W2 (3 real columns)
            pl.BlockSpec((1, N), resident),             # c2
        ],
        out_specs=pl.BlockSpec((Bt, N), lambda i: (i, 0)),
        compiler_params=pltpu.CompilerParams(
            dimension_semantics=("parallel",)),
    )(x.astype(jnp.float32), w0, c0, w1, c1, w2, c2)

    return out


# ---------------------------------------------------------------------------
# Parameter prep: synthetic Linear + eval-mode BN, folded for the TPU kernel.
# ---------------------------------------------------------------------------
def init_params(key, county_dim, channels, out_channels=3,
                matmul_dtype=jnp.bfloat16):
    assert len(channels) == 2, "Net's MLP has two hidden layers"
    eps = 1e-5
    dims = [county_dim] + list(channels) + [out_channels]

    layers_q = []   # (bf16 folded weight, f32 folded bias)
    layers_f = []   # f32 folded weight (for quantization-error sanity check)
    for li in range(len(dims) - 1):
        kin, kout = dims[li], dims[li + 1]
        key, kw, kb, kg, kbeta, km, kv = jax.random.split(key, 7)
        w = jax.random.normal(kw, (kin, kout), jnp.float32) / jnp.sqrt(kin)
        b = jax.random.normal(kb, (kout,), jnp.float32) * 0.01
        if li < len(channels):                      # hidden layer: fold BN
            gamma = 1.0 + 0.1 * jax.random.normal(kg, (kout,), jnp.float32)
            beta = 0.1 * jax.random.normal(kbeta, (kout,), jnp.float32)
            rmean = 0.1 * jax.random.normal(km, (kout,), jnp.float32)
            rvar = jnp.abs(1.0 + 0.1 * jax.random.normal(kv, (kout,),
                                                         jnp.float32))
            scale = gamma * jax.lax.rsqrt(rvar + eps)
            w = w * scale[None, :]                  # fold scale into weights
            b = b * scale + (beta - rmean * scale)  # fold bias + shift
        c = b[None, :]                              # (1, kout) f32 bias row
        layers_q.append((w.astype(matmul_dtype), c))
        layers_f.append(w)

    return {
        "w0": layers_q[0][0], "c0": layers_q[0][1],
        "w1": layers_q[1][0], "c1": layers_q[1][1],
        "w2": layers_q[2][0], "c2": layers_q[2][1],
        "w0_f32": layers_f[0], "w1_f32": layers_f[1], "w2_f32": layers_f[2],
        "county_dim": county_dim, "out_channels": out_channels,
    }


def net_forward_ref(params, x):
    """Plain-JAX reference (same folded bf16 weights, f32 accumulation)."""
    h = x.astype(jnp.float32)
    for w, c, relu in ((params["w0"], params["c0"], True),
                       (params["w1"], params["c1"], True),
                       (params["w2"], params["c2"], False)):
        h = jnp.dot(h.astype(w.dtype), w,
                    preferred_element_type=jnp.float32) + c
        if relu:
            h = jnp.maximum(h, 0.0)
    return h


def net_forward_ref_f32(params, x):
    """Plain-JAX f32 reference (unquantized folded weights)."""
    h = x.astype(jnp.float32)
    for w, c, relu in ((params["w0_f32"], params["c0"], True),
                       (params["w1_f32"], params["c1"], True),
                       (params["w2_f32"], params["c2"], False)):
        h = jnp.dot(h, w, preferred_element_type=jnp.float32) + c
        if relu:
            h = jnp.maximum(h, 0.0)
    return h


if __name__ == "__main__":
    # Small shapes consistent with the module: batch of counties, county_dim
    # features per county, two hidden channels, 3 outputs (a, b, c).
    county_dim = 32
    channels = [128, 128]

    key = jax.random.PRNGKey(0)
    key, kx1, kx2 = jax.random.split(key, 3)
    params = init_params(key, county_dim, channels, out_channels=3)

    # Case 1: aligned batch, single tile.
    x1 = jax.random.normal(kx1, (8, county_dim), jnp.float32)
    out1 = jax.block_until_ready(net_forward(params, x1))
    assert out1.shape == (8, 3)
    assert jnp.allclose(out1, net_forward_ref(params, x1),
                        atol=1e-3, rtol=1e-3), "mismatch vs bf16 reference"

    # Case 2: ragged batch over multiple tiles (exercises the masked partial
    # last block and the multi-step parallel grid).
    x2 = jax.random.normal(kx2, (20, county_dim), jnp.float32)
    out2 = jax.block_until_ready(net_forward(params, x2, max_batch_tile=8))
    assert out2.shape == (20, 3)
    assert jnp.allclose(out2, net_forward_ref(params, x2),
                        atol=1e-3, rtol=1e-3), "mismatch vs bf16 reference"

    # Sanity vs the unquantized f32 weights (bounds bf16 quantization error).
    assert jnp.allclose(out1, net_forward_ref_f32(params, x1),
                        atol=1e-1, rtol=1e-1), "bf16 quantization error too big"

    print("KERNEL_OK")
</pallas_src>

<mosaic_0001>
module attributes {stable_mosaic.version = 11 : i64} {
  func.func @_fused_mlp_kernel(%arg0: i32, %arg1: memref<8x32xf32, #tpu.memory_space<vmem>>, %arg2: memref<32x128xbf16, #tpu.memory_space<vmem>>, %arg3: memref<1x128xf32, #tpu.memory_space<vmem>>, %arg4: memref<128x128xbf16, #tpu.memory_space<vmem>>, %arg5: memref<1x128xf32, #tpu.memory_space<vmem>>, %arg6: memref<128x3xbf16, #tpu.memory_space<vmem>>, %arg7: memref<1x3xf32, #tpu.memory_space<vmem>>, %arg8: memref<8x3xf32, #tpu.memory_space<vmem>>) attributes {dimension_semantics = [#tpu.dimension_semantics<parallel>], iteration_bounds = array<i64: 1>, scalar_prefetch = 0 : i64, scratch_operands = 0 : i64, tpu.core_type = #tpu.core_type<tc>, window_params = [{transform_indices = @transform_0, window_bounds = array<i64: 8, 32>}, {pipeline_mode = #tpu.pipeline_mode<synchronous>, transform_indices = @transform_1, window_bounds = array<i64: 32, 128>}, {pipeline_mode = #tpu.pipeline_mode<synchronous>, transform_indices = @transform_2, window_bounds = array<i64: 1, 128>}, {pipeline_mode = #tpu.pipeline_mode<synchronous>, transform_indices = @transform_3, window_bounds = array<i64: 128, 128>}, {pipeline_mode = #tpu.pipeline_mode<synchronous>, transform_indices = @transform_4, window_bounds = array<i64: 1, 128>}, {pipeline_mode = #tpu.pipeline_mode<synchronous>, transform_indices = @transform_5, window_bounds = array<i64: 128, 3>}, {pipeline_mode = #tpu.pipeline_mode<synchronous>, transform_indices = @transform_6, window_bounds = array<i64: 1, 3>}, {transform_indices = @transform_7, window_bounds = array<i64: 8, 3>}]} {
    %c0 = arith.constant 0 : index
    %c0_0 = arith.constant 0 : index
    %0 = vector.load %arg1[%c0, %c0_0] : memref<8x32xf32, #tpu.memory_space<vmem>>, vector<8x32xf32>
    %1 = arith.truncf %0 : vector<8x32xf32> to vector<8x32xbf16>
    %c0_1 = arith.constant 0 : index
    %c0_2 = arith.constant 0 : index
    %2 = vector.load %arg2[%c0_1, %c0_2] : memref<32x128xbf16, #tpu.memory_space<vmem>>, vector<32x128xbf16>
    %cst = arith.constant dense<0.000000e+00> : vector<8x128xf32>
    %3 = tpu.matmul %1, %2, %cst {dimension_numbers = #tpu.dot_dimension_numbers<[1], [0], [0], [1], [0, 0, 1, 1], [], []>} : vector<8x32xbf16>, vector<32x128xbf16>, vector<8x128xf32> -> vector<8x128xf32>
    %c0_3 = arith.constant 0 : index
    %c0_4 = arith.constant 0 : index
    %4 = vector.load %arg3[%c0_3, %c0_4] : memref<1x128xf32, #tpu.memory_space<vmem>>, vector<1x128xf32>
    %5 = vector.broadcast %4 : vector<1x128xf32> to vector<8x128xf32>
    %6 = arith.addf %3, %5 : vector<8x128xf32>
    %cst_5 = arith.constant 0.000000e+00 : f32
    %7 = vector.broadcast %cst_5 : f32 to vector<8x128xf32>
    %8 = arith.maximumf %6, %7 : vector<8x128xf32>
    %9 = arith.truncf %8 : vector<8x128xf32> to vector<8x128xbf16>
    %c0_6 = arith.constant 0 : index
    %c0_7 = arith.constant 0 : index
    %10 = vector.load %arg4[%c0_6, %c0_7] : memref<128x128xbf16, #tpu.memory_space<vmem>>, vector<128x128xbf16>
    %cst_8 = arith.constant dense<0.000000e+00> : vector<8x128xf32>
    %11 = tpu.matmul %9, %10, %cst_8 {dimension_numbers = #tpu.dot_dimension_numbers<[1], [0], [0], [1], [0, 0, 1, 1], [], []>} : vector<8x128xbf16>, vector<128x128xbf16>, vector<8x128xf32> -> vector<8x128xf32>
    %c0_9 = arith.constant 0 : index
    %c0_10 = arith.constant 0 : index
    %12 = vector.load %arg5[%c0_9, %c0_10] : memref<1x128xf32, #tpu.memory_space<vmem>>, vector<1x128xf32>
    %13 = vector.broadcast %12 : vector<1x128xf32> to vector<8x128xf32>
    %14 = arith.addf %11, %13 : vector<8x128xf32>
    %cst_11 = arith.constant 0.000000e+00 : f32
    %15 = vector.broadcast %cst_11 : f32 to vector<8x128xf32>
    %16 = arith.maximumf %14, %15 : vector<8x128xf32>
    %17 = arith.truncf %16 : vector<8x128xf32> to vector<8x128xbf16>
    %c0_12 = arith.constant 0 : index
    %c0_13 = arith.constant 0 : index
    %18 = vector.load %arg6[%c0_12, %c0_13] : memref<128x3xbf16, #tpu.memory_space<vmem>>, vector<128x3xbf16>
    %cst_14 = arith.constant dense<0.000000e+00> : vector<8x3xf32>
    %19 = tpu.matmul %17, %18, %cst_14 {dimension_numbers = #tpu.dot_dimension_numbers<[1], [0], [0], [1], [0, 0, 1, 1], [], []>} : vector<8x128xbf16>, vector<128x3xbf16>, vector<8x3xf32> -> vector<8x3xf32>
    %c0_15 = arith.constant 0 : index
    %c0_16 = arith.constant 0 : index
    %20 = vector.load %arg7[%c0_15, %c0_16] : memref<1x3xf32, #tpu.memory_space<vmem>>, vector<1x3xf32>
    %21 = vector.broadcast %20 : vector<1x3xf32> to vector<8x3xf32>
    %22 = arith.addf %19, %21 : vector<8x3xf32>
    %c0_17 = arith.constant 0 : index
    %c0_18 = arith.constant 0 : index
    %23 = vector.load %arg8[%c0_17, %c0_18] : memref<8x3xf32, #tpu.memory_space<vmem>>, vector<8x3xf32>
    tpu.vector_store %arg8[%c0_17, %c0_18], %22 {strides = array<i32>} : memref<8x3xf32, #tpu.memory_space<vmem>>, vector<8x3xf32>,
    return
  }
  func.func @transform_0(%arg0: i32) -> (i32, i32) {
    %c0_i32 = arith.constant 0 : i32
    %c0_i32_0 = arith.constant 0 : i32
    return %arg0, %c0_i32 : i32, i32
  }
  func.func @transform_1(%arg0: i32) -> (i32, i32) {
    %c0_i32 = arith.constant 0 : i32
    %c0_i32_0 = arith.constant 0 : i32
    %c0_i32_1 = arith.constant 0 : i32
    return %c0_i32, %c0_i32_0 : i32, i32
  }
  func.func @transform_2(%arg0: i32) -> (i32, i32) {
    %c0_i32 = arith.constant 0 : i32
    %c0_i32_0 = arith.constant 0 : i32
    %c0_i32_1 = arith.constant 0 : i32
    return %c0_i32, %c0_i32_0 : i32, i32
  }
  func.func @transform_3(%arg0: i32) -> (i32, i32) {
    %c0_i32 = arith.constant 0 : i32
    %c0_i32_0 = arith.constant 0 : i32
    %c0_i32_1 = arith.constant 0 : i32
    return %c0_i32, %c0_i32_0 : i32, i32
  }
  func.func @transform_4(%arg0: i32) -> (i32, i32) {
    %c0_i32 = arith.constant 0 : i32
    %c0_i32_0 = arith.constant 0 : i32
    %c0_i32_1 = arith.constant 0 : i32
    return %c0_i32, %c0_i32_0 : i32, i32
  }
  func.func @transform_5(%arg0: i32) -> (i32, i32) {
    %c0_i32 = arith.constant 0 : i32
    %c0_i32_0 = arith.constant 0 : i32
    %c0_i32_1 = arith.constant 0 : i32
    return %c0_i32, %c0_i32_0 : i32, i32
  }
  func.func @transform_6(%arg0: i32) -> (i32, i32) {
    %c0_i32 = arith.constant 0 : i32
    %c0_i32_0 = arith.constant 0 : i32
    %c0_i32_1 = arith.constant 0 : i32
    return %c0_i32, %c0_i32_0 : i32, i32
  }
  func.func @transform_7(%arg0: i32) -> (i32, i32) {
    %c0_i32 = arith.constant 0 : i32
    %c0_i32_0 = arith.constant 0 : i32
    return %arg0, %c0_i32 : i32, i32
  }
}

</mosaic_0001>

<bundles_post_ra>
// kernel: tpu_custom_call.1
= control target key start
LH: loop header
LB: loop body
LE: loop exit
PB: predicated region body
PF: predicated region fallthrough
CT: control target
= control target key end

     0   :  { %12 = vsyncpa [#allocation3], 0  ;;  %s481_s24 = smov [#allocation2]   ;;  %s625_s0 = inlined_call_operand.vmem [shape: f32[8,32], index: 0, kind: input, shape index: {}]   ;;  %s626_s1 = inlined_call_operand.hbm [shape: bf16[32,128], index: 1, kind: input, shape index: {}]   ;;  %s627_s2 = inlined_call_operand.vmem [shape: f32[1,128], index: 2, kind: input, shape index: {}]   ;;  %s628_s3 = inlined_call_operand.vmem [shape: bf16[128,128], index: 3, kind: input, shape index: {}]   ;;  %s629_s4 = inlined_call_operand.vmem [shape: f32[1,128], index: 4, kind: input, shape index: {}]   ;;  %s630_s5 = inlined_call_operand.vmem [shape: bf16[128,3], index: 5, kind: input, shape index: {}]   ;;  %s631_s6 = inlined_call_operand.vmem [shape: f32[1,3], index: 6, kind: input, shape index: {}]   ;;  %s632_s7 = inlined_call_operand.vmem [shape: f32[8,3], index: 7, kind: output, shape index: {}]  }
   0x1   :  { %s20_s25 = sshll.u32 %s481_s24, 4  ;;  %s457_s28 = scalar_lea.hbm %s626_s1, 256  ;;  %s21_s25 = int_to_ptr.vmem [resolvable:$true] %s20_s25 }
   0x2   :  { %p458_p0 = scmp.ne.s32.totalorder %s626_s1, %s457_s28  ;;  %p461_p1 = scmp.lt.u32.totalorder %s457_s28, %s626_s1 }
   0x4   :  { %p463_p2 = pnand %p461_p1, %p458_p0 }
   0x6   :  { %466 = shalt.err (!%p463_p2)
}
   0x7   :  { %s467_s10 = scalar_lea.vmem %s21_s25, 256  ;;  %p472_p4 = scmp.lt.s32.totalorder %s21_s25, %s21_s25 }
   0x8   :  { %p468_p3 = scmp.ne.s32.totalorder %s21_s25, %s467_s10  ;;  %p473_p5 = scmp.lt.s32.totalorder %s467_s10, %s467_s10 }
   0xa   :  { %p474_p6 = por %p473_p5, %p472_p4 }
   0xc   :  { %p475_p7 = pnand %p474_p6, %p468_p3 }
   0xe   :  { %478 = shalt.err (!%p475_p7)
}
   0xf   :  { %s482_s11 = smov 64   ;;  %s483_s12 = smov 4  }
  0x10   :  { %26 = dma.hbm_to_vmem [thread:$0]  %s626_s1, 256, %s21_s25, [#allocation3], %s482_s11, %s482_s11, %s483_s12  }
  0x11   :  { %479 = dma.done.wait [#allocation3], 256  }
  0x12   :  { %480 = vsyncadd [#allocation3], 4294967040  ;;  %v484_v0 = vmov 0.0   ;;  %vm485_vm0 = vmmov 0   ;;  %v439_v1 = vld [vmem:[#allocation2] sm:$0xff]   ;;  %v440_v2 = vld [vmem:[#allocation2 + $0x8] sm:$0xff]  }
  0x13   :  { %386 = vmatprep.subr.bf16.mxu0 %v484_v0  ;;  %390 = vmatprep.mubr.msk.bf16.mxu0 %vm485_vm0, %v484_v0  ;;  %v41_v3 = vld [vmem:[%s625_s0] sm:$0xff]  ;;  %v442_v6 = vld [vmem:[%s628_s3 + $0x8] sm:$0xff]   ;;  %vm66_vm1 = vcmask 261120   ;;  %v443_v7 = vld [vmem:[%s628_s3 + $0x10] sm:$0xff]   ;;  %vm336_vm2 = vcmask 23552  }
  0x14   :  { %394 = vmatprep.subr.bf16.mxu1 %v484_v0  ;;  %410 = vmatprep.mubr.msk.bf16.mxu1 %vm485_vm0, %v484_v0  ;;  %v441_v4 = vld [vmem:[%s628_s3] sm:$0xff]   ;;  %v42_v5 = vpack.c.bf16 %v41_v3, %v41_v3  ;;  %v444_v8 = vld [vmem:[%s628_s3 + $0x18] sm:$0xff]   ;;  %v446_v10 = vld [vmem:[%s628_s3 + $0x28] sm:$0xff]  }
  0x15   :  { %387 = vmatpush3.bf16.msra.mxu0 %v439_v1  ;;  %395 = vmatpush3.bf16.msra.mxu1 %v441_v4  ;;  %v445_v9 = vld [vmem:[%s628_s3 + $0x20] sm:$0xff]   ;;  %v447_v11 = vld [vmem:[%s628_s3 + $0x30] sm:$0xff]   ;;  %v448_v12 = vld [vmem:[%s628_s3 + $0x38] sm:$0xff]  }
  0x16   :  { %388 = vmatprep.subr.bf16.mxu0 %v484_v0  ;;  %396 = vmatprep.subr.bf16.mxu1 %v484_v0  ;;  %v449_v13 = vld [vmem:[%s630_s5] sm:$0xff]   ;;  %v450_v14 = vld [vmem:[%s630_s5 + $0x8] sm:$0xff]   ;;  %v451_v15 = vld [vmem:[%s630_s5 + $0x10] sm:$0xff]  }
  0x17   :  { %v452_v16 = vld [vmem:[%s630_s5 + $0x18] sm:$0xff]   ;;  %v453_v17 = vld [vmem:[%s630_s5 + $0x20] sm:$0xff]   ;;  %v454_v18 = vld [vmem:[%s630_s5 + $0x28] sm:$0xff]  }
  0x18   :  { %v343_v19 = vld [vmem:[%s627_s2] ss:$0 sm:$0xff]  ;;  %v455_v27 = vld [vmem:[%s630_s5 + $0x30] sm:$0xff]   ;;  %v456_v28 = vld [vmem:[%s630_s5 + $0x38] sm:$0xff]  }
  0x19   :  { %389 = vmatpush3.bf16.msra.mxu0 %v440_v2  ;;  %397 = vmatpush3.bf16.msra.mxu1 %v442_v6  ;;  %v347_v29 = vld [vmem:[%s629_s4] ss:$0 sm:$0xff] }
  0x1a   :  { %414 = vmatprep.subr.bf16.mxu0 %v484_v0  ;;  %398 = vmatprep.subr.bf16.mxu1 %v484_v0  ;;  %v356_v37 = vld [vmem:[%s631_s6] ss:$0 sm:$0xff] }
  0x1c   :  { %391 = vmatmul.mubr.msk.bf16.vlgmr.msra.gmra.mrb[0].mxu0 %vm66_vm1, %v42_v5 }
  0x1d   :  { %430 = vmatprep.mubr.msk.bf16.mxu0 %vm485_vm0, %v484_v0  ;;  %399 = vmatpush3.bf16.msra.mxu1 %v443_v7 }
  0x1e   :  { %400 = vmatprep.subr.bf16.mxu1 %v484_v0  ;;  %415 = vmatpush3.bf16.msra.mxu0 %v449_v13 }
  0x1f   :  { %416 = vmatprep.subr.bf16.mxu0 %v484_v0 }
  0x21   :  { %401 = vmatpush3.bf16.msra.mxu1 %v444_v8 }
  0x22   :  { %402 = vmatprep.subr.bf16.mxu1 %v484_v0  ;;  %417 = vmatpush3.bf16.msra.mxu0 %v450_v14 }
  0x23   :  { %418 = vmatprep.subr.bf16.mxu0 %v484_v0 }
  0x25   :  { %403 = vmatpush3.bf16.msra.mxu1 %v445_v9 }
  0x26   :  { %404 = vmatprep.subr.bf16.mxu1 %v484_v0  ;;  %419 = vmatpush3.bf16.msra.mxu0 %v451_v15 }
  0x27   :  { %420 = vmatprep.subr.bf16.mxu0 %v484_v0 }
  0x29   :  { %405 = vmatpush3.bf16.msra.mxu1 %v446_v10 }
  0x2a   :  { %406 = vmatprep.subr.bf16.mxu1 %v484_v0  ;;  %421 = vmatpush3.bf16.msra.mxu0 %v452_v16 }
  0x2b   :  { %422 = vmatprep.subr.bf16.mxu0 %v484_v0 }
  0x2d   :  { %407 = vmatpush3.bf16.msra.mxu1 %v447_v11 }
  0x2e   :  { %408 = vmatprep.subr.bf16.mxu1 %v484_v0  ;;  %423 = vmatpush3.bf16.msra.mxu0 %v453_v17 }
  0x2f   :  { %424 = vmatprep.subr.bf16.mxu0 %v484_v0 }
  0x31   :  { %409 = vmatpush3.bf16.msra.mxu1 %v448_v12 }
  0x32   :  { %425 = vmatpush3.bf16.msra.mxu0 %v454_v18 }
  0x33   :  { %426 = vmatprep.subr.bf16.mxu0 %v484_v0 }
  0x36   :  { %427 = vmatpush3.bf16.msra.mxu0 %v455_v27 }
  0x37   :  { %428 = vmatprep.subr.bf16.mxu0 %v484_v0 }
  0x3a   :  { %429 = vmatpush3.bf16.msra.mxu0 %v456_v28 }
  0xef   :  { %v104_v20 = vpop.f32.mrb[0].mxu0 }
  0xf0   :  { %v105_v21 = vadd.f32 %v343_v19, %v104_v20  ;;  %v392_v22 = vpop.f32.mrb[1].mxu0 }
  0xf1   :  { %v107_v23 = vpop.f32.mrb[2].mxu0 }
  0xf2   :  { %v110_v24 = vmax.f32 %v105_v21, 0.0  ;;  %v393_v25 = vpop.f32.mrb[3].mxu0 }
  0xf4   :  { %v111_v26 = vpack.c.bf16 %v110_v24, %v110_v24 }
  0xf6   :  { %411 = vmatmul.mubr.bf16.vlgmr.msra.gmra.mrb[0].mxu1 %v111_v26 }
 0x1c9   :  { %v217_v30 = vpop.f32.mrb[0].mxu1 }
 0x1ca   :  { %v218_v31 = vadd.f32 %v347_v29, %v217_v30  ;;  %v412_v32 = vpop.f32.mrb[1].mxu1 }
 0x1cb   :  { %v220_v33 = vpop.f32.mrb[2].mxu1 }
 0x1cc   :  { %v223_v34 = vmax.f32 %v218_v31, 0.0  ;;  %v413_v35 = vpop.f32.mrb[3].mxu1 }
 0x1ce   :  { %v224_v36 = vpack.c.bf16 %v223_v34, %v223_v34 }
 0x1d0   :  { %431 = vmatmul.mubr.bf16.vlgmr.msra.gmra.mrb[4].mxu0 %v224_v36 }
 0x2a3   :  { %v330_v38 = vpop.f32.mrb[4].mxu0 }
 0x2a4   :  { %v331_v39 = vadd.f32 %v356_v37, %v330_v38  ;;  %v432_v40 = vpop.f32.mrb[5].mxu0 }
 0x2a5   :  { %v333_v41 = vpop.f32.mrb[6].mxu0 }
 0x2a6   :  { %337 = vst.msk [vmem:[%s632_s7] sm:$0xff] %vm336_vm2, %v331_v39  ;;  %v433_v42 = vpop.f32.mrb[7].mxu0 }
 0x2a7   :  { %342 = vsyncpa [#allocation3], 1 }

</bundles_post_ra>
